<compile_context>
chip_gen: v7x
topology: tpu7x:2x2x1
jax: 0.10.0
libtpu: 0.0.40
codegen_flags: <defaults>
</compile_context>

<pallas_src>
import jax
import jax.numpy as jnp
from jax.experimental import pallas as pl
from jax.experimental.pallas import tpu as pltpu


# ---------------------------------------------------------------------------
# Kernel
# ---------------------------------------------------------------------------
def _mlp8_kernel(x_ref, w1_ref, w2_ref, w3_ref, b_ref, o_ref):
    # Activations cast to bf16 right before each dot -> native bf16x bf16
    # single-pass MXU; accumulation stays f32.
    x = x_ref[...].astype(jnp.bfloat16)               # (TB, ni)   bf16

    b1 = b_ref[0:1, :]                                # (1, 512)  f32
    b2 = b_ref[1:2, 0:160]                            # (1, 160)  f32
    b3 = b_ref[2:3, 0:8]                              # (1, 8)    f32

    # fc1: Linear -> ReLU -> (Dropout = identity at inference), x2
    h1 = jnp.dot(x, w1_ref[...], preferred_element_type=jnp.float32) + b1
    h1 = jnp.maximum(h1, 0.0).astype(jnp.bfloat16)    # (TB, 512) bf16

    h2 = jnp.dot(h1, w2_ref[...], preferred_element_type=jnp.float32) + b2
    h2 = jnp.maximum(h2, 0.0).astype(jnp.bfloat16)    # (TB, 160) bf16

    # Fused l1/l2/l3 + concat + column permutation (baked into w3/b3).
    o = jnp.dot(h2, w3_ref[...], preferred_element_type=jnp.float32) + b3
    o_ref[...] = o.astype(o_ref.dtype)                # (TB, 8)   f32


# ---------------------------------------------------------------------------
# Wrapper
# ---------------------------------------------------------------------------
def _round_up(x, m):
    return ((x + m - 1) // m) * m


def mlp8_forward(x, packed, *, block_b=512):
    """x: (B, ni) f32. packed: output of pack_params(). Returns (B, 8) f32."""
    w1, w2, w3, bias = packed
    B, ni = x.shape

    # Batch tile: as large as requested (fills MXU rows, amortizes per-step
    # overhead), but clamped so that modest batches still yield >=2 grid tiles
    # (v7x megacore) and small batches aren't padded past one tile.
    tb = max(8, min(block_b, _round_up(-(-B // 2), 8)))
    nb = pl.cdiv(B, tb)
    Bp = nb * tb
    if Bp != B:
        x = jnp.pad(x, ((0, Bp - B), (0, 0)))

    out = pl.pallas_call(
        _mlp8_kernel,
        out_shape=jax.ShapeDtypeStruct((Bp, 8), jnp.float32),
        grid_spec=pltpu.PrefetchScalarGridSpec(
            num_scalar_prefetch=0,
            grid=(nb,),
            in_specs=[
                pl.BlockSpec((tb, ni), lambda i: (i, 0)),        # x tile
                pl.BlockSpec((ni, 512), lambda i: (0, 0)),       # weights: resident
                pl.BlockSpec((512, 160), lambda i: (0, 0)),
                pl.BlockSpec((160, 8), lambda i: (0, 0)),        # fused heads
                pl.BlockSpec((8, 512), lambda i: (0, 0)),        # coalesced bias slab
            ],
            out_specs=pl.BlockSpec((tb, 8), lambda i: (i, 0)),   # narrow f32 output
        ),
        compiler_params=pltpu.CompilerParams(
            dimension_semantics=("parallel",)),                  # v7x: 2 TCs share batch
    )(x, w1, w2, w3, bias)

    return out[:B]


# ---------------------------------------------------------------------------
# Parameter construction (PyTorch-layout params -> kernel-layout slabs)
# ---------------------------------------------------------------------------
def init_params(key, ni):
    """Mimics nn.Linear default init U(-1/sqrt(fan_in), 1/sqrt(fan_in)).
    Weights are stored bf16 (HBM-resident form used by the kernel); biases f32."""
    def linear(k, fan_in, fan_out):
        kw, kb = jax.random.split(k)
        bound = float(fan_in) ** -0.5
        w = jax.random.uniform(kw, (fan_out, fan_in), jnp.float32, -bound, bound)
        b = jax.random.uniform(kb, (fan_out,), jnp.float32, -bound, bound)
        return w.astype(jnp.bfloat16), b

    k1, k2, k3, k4, k5 = jax.random.split(key, 5)
    fc1_w1, fc1_b1 = linear(k1, ni, 512)
    fc1_w2, fc1_b2 = linear(k2, 512, 160)
    l1_w, l1_b = linear(k3, 40, 2)
    l2_w, l2_b = linear(k4, 80, 4)
    l3_w, l3_b = linear(k5, 40, 2)
    return dict(fc1_w1=fc1_w1, fc1_b1=fc1_b1, fc1_w2=fc1_w2, fc1_b2=fc1_b2,
                l1_w=l1_w, l1_b=l1_b, l2_w=l2_w, l2_b=l2_b, l3_w=l3_w, l3_b=l3_b)


_PERM = (0, 1, 6, 2, 3, 4, 7, 5)


def pack_params(p):
    """Build kernel-side arrays:
       w1 (ni,512) bf16, w2 (512,160) bf16,
       w3 (160,8)  bf16  = fused [l1|l2|l3] + concat + permutation,
       bias (8,512) f32  = rows [b1 | b2(pad) | b_head(pad) | 0...]."""
    perm = jnp.asarray(_PERM, dtype=jnp.int32)

    w1 = jnp.transpose(p["fc1_w1"])                       # (ni, 512) bf16
    w2 = jnp.transpose(p["fc1_w2"])                       # (512, 160) bf16

    # Block-structured concat weight: rows = h features, cols = concat order.
    w_cat = jnp.zeros((160, 8), jnp.float32)
    w_cat = w_cat.at[0:40, 0:2].set(p["l1_w"].astype(jnp.float32).T)
    w_cat = w_cat.at[40:120, 2:6].set(p["l2_w"].astype(jnp.float32).T)
    w_cat = w_cat.at[120:160, 6:8].set(p["l3_w"].astype(jnp.float32).T)
    b_cat = jnp.concatenate([p["l1_b"], p["l2_b"], p["l3_b"]])
    w3 = w_cat[:, perm].astype(jnp.bfloat16)              # bake [0,1,6,2,3,4,7,5] gather
    b_head = b_cat[perm]

    bias = jnp.zeros((8, 512), jnp.float32)
    bias = bias.at[0, :512].set(p["fc1_b1"])
    bias = bias.at[1, :160].set(p["fc1_b2"])
    bias = bias.at[2, :8].set(b_head)
    return w1, w2, w3, bias


# ---------------------------------------------------------------------------
# Pure-JAX reference (literal translation of the PyTorch forward, eval mode)
# ---------------------------------------------------------------------------
def _reference(x, p):
    hp = jax.lax.Precision.HIGHEST

    def lin(a, w, b):
        return jnp.dot(a, w.astype(jnp.float32).T, precision=hp) + b

    h = jnp.maximum(lin(x, p["fc1_w1"], p["fc1_b1"]), 0.0)   # Dropout -> identity
    h = jnp.maximum(lin(h, p["fc1_w2"], p["fc1_b2"]), 0.0)   # Dropout -> identity
    x1 = lin(h[:, :40], p["l1_w"], p["l1_b"])
    x2 = lin(h[:, 40:120], p["l2_w"], p["l2_b"])
    x3 = lin(h[:, 120:], p["l3_w"], p["l3_b"])
    cat = jnp.concatenate([x1, x2, x3], axis=1)
    return cat[:, jnp.asarray(_PERM)]


if __name__ == "__main__":
    # TODO(synk): training-mode Dropout(0.1) (RNG mask) is not implemented; the
    # kernel implements eval/inference semantics where Dropout is the identity.
    ni = 32     # input feature dim
    B = 16      # small test batch -> 2 grid tiles of 8 rows each

    key = jax.random.PRNGKey(0)
    key, kx = jax.random.split(key)
    params = init_params(key, ni)
    packed = pack_params(params)

    x = jax.random.normal(kx, (B, ni), jnp.float32)

    out = mlp8_forward(x, packed)          # default (large) block_b, clamped for small B
    out = jax.block_until_ready(out)
    ref = _reference(x, params)
    assert out.shape == (B, 8), out.shape
    # Tolerance covers bf16 activation quantization through three bf16 MXU dots
    # vs. the HIGHEST-precision f32 reference (measured error ~1e-3 scale).
    assert jnp.allclose(out, ref, atol=2e-2, rtol=2e-2), (out, ref)

    # Also exercise the padding / tile-clamp path with a ragged batch.
    x_odd = jax.random.normal(jax.random.PRNGKey(1), (13, ni), jnp.float32)
    out_odd = jax.block_until_ready(mlp8_forward(x_odd, packed))
    ref_odd = _reference(x_odd, params)
    assert out_odd.shape == (13, 8), out_odd.shape
    assert jnp.allclose(out_odd, ref_odd, atol=2e-2, rtol=2e-2), (out_odd, ref_odd)

    print("KERNEL_OK")
</pallas_src>

<mosaic_0001>
module attributes {stable_mosaic.version = 11 : i64} {
  func.func @_mlp8_kernel(%arg0: i32, %arg1: memref<8x32xf32, #tpu.memory_space<vmem>>, %arg2: memref<32x512xbf16, #tpu.memory_space<vmem>>, %arg3: memref<512x160xbf16, #tpu.memory_space<vmem>>, %arg4: memref<160x8xbf16, #tpu.memory_space<vmem>>, %arg5: memref<8x512xf32, #tpu.memory_space<vmem>>, %arg6: memref<8x8xf32, #tpu.memory_space<vmem>>) attributes {dimension_semantics = [#tpu.dimension_semantics<parallel>], iteration_bounds = array<i64: 2>, scalar_prefetch = 0 : i64, scratch_operands = 0 : i64, tpu.core_type = #tpu.core_type<tc>, window_params = [{transform_indices = @transform_0, window_bounds = array<i64: 8, 32>}, {pipeline_mode = #tpu.pipeline_mode<synchronous>, transform_indices = @transform_1, window_bounds = array<i64: 32, 512>}, {pipeline_mode = #tpu.pipeline_mode<synchronous>, transform_indices = @transform_2, window_bounds = array<i64: 512, 160>}, {pipeline_mode = #tpu.pipeline_mode<synchronous>, transform_indices = @transform_3, window_bounds = array<i64: 160, 8>}, {pipeline_mode = #tpu.pipeline_mode<synchronous>, transform_indices = @transform_4, window_bounds = array<i64: 8, 512>}, {transform_indices = @transform_5, window_bounds = array<i64: 8, 8>}]} {
    %c0 = arith.constant 0 : index
    %c0_0 = arith.constant 0 : index
    %0 = vector.load %arg1[%c0, %c0_0] : memref<8x32xf32, #tpu.memory_space<vmem>>, vector<8x32xf32>
    %1 = arith.truncf %0 : vector<8x32xf32> to vector<8x32xbf16>
    %c0_1 = arith.constant 0 : index
    %c0_2 = arith.constant 0 : index
    %2 = vector.load %arg5[%c0_1, %c0_2] : memref<8x512xf32, #tpu.memory_space<vmem>>, vector<1x512xf32>
    %c1 = arith.constant 1 : index
    %c0_3 = arith.constant 0 : index
    %3 = vector.load %arg5[%c1, %c0_3] : memref<8x512xf32, #tpu.memory_space<vmem>>, vector<1x160xf32>
    %c2 = arith.constant 2 : index
    %c0_4 = arith.constant 0 : index
    %4 = vector.load %arg5[%c2, %c0_4] : memref<8x512xf32, #tpu.memory_space<vmem>>, vector<1x8xf32>
    %c0_5 = arith.constant 0 : index
    %c0_6 = arith.constant 0 : index
    %5 = vector.load %arg2[%c0_5, %c0_6] : memref<32x512xbf16, #tpu.memory_space<vmem>>, vector<32x512xbf16>
    %cst = arith.constant dense<0.000000e+00> : vector<8x512xf32>
    %6 = tpu.matmul %1, %5, %cst {dimension_numbers = #tpu.dot_dimension_numbers<[1], [0], [0], [1], [0, 0, 1, 1], [], []>} : vector<8x32xbf16>, vector<32x512xbf16>, vector<8x512xf32> -> vector<8x512xf32>
    %7 = vector.broadcast %2 : vector<1x512xf32> to vector<8x512xf32>
    %8 = arith.addf %6, %7 : vector<8x512xf32>
    %cst_7 = arith.constant 0.000000e+00 : f32
    %9 = vector.broadcast %cst_7 : f32 to vector<8x512xf32>
    %10 = arith.maximumf %8, %9 : vector<8x512xf32>
    %11 = arith.truncf %10 : vector<8x512xf32> to vector<8x512xbf16>
    %c0_8 = arith.constant 0 : index
    %c0_9 = arith.constant 0 : index
    %12 = vector.load %arg3[%c0_8, %c0_9] : memref<512x160xbf16, #tpu.memory_space<vmem>>, vector<512x160xbf16>
    %cst_10 = arith.constant dense<0.000000e+00> : vector<8x160xf32>
    %13 = tpu.matmul %11, %12, %cst_10 {dimension_numbers = #tpu.dot_dimension_numbers<[1], [0], [0], [1], [0, 0, 1, 1], [], []>} : vector<8x512xbf16>, vector<512x160xbf16>, vector<8x160xf32> -> vector<8x160xf32>
    %14 = vector.broadcast %3 : vector<1x160xf32> to vector<8x160xf32>
    %15 = arith.addf %13, %14 : vector<8x160xf32>
    %cst_11 = arith.constant 0.000000e+00 : f32
    %16 = vector.broadcast %cst_11 : f32 to vector<8x160xf32>
    %17 = arith.maximumf %15, %16 : vector<8x160xf32>
    %18 = arith.truncf %17 : vector<8x160xf32> to vector<8x160xbf16>
    %c0_12 = arith.constant 0 : index
    %c0_13 = arith.constant 0 : index
    %19 = vector.load %arg4[%c0_12, %c0_13] : memref<160x8xbf16, #tpu.memory_space<vmem>>, vector<160x8xbf16>
    %cst_14 = arith.constant dense<0.000000e+00> : vector<8x8xf32>
    %20 = tpu.matmul %18, %19, %cst_14 {dimension_numbers = #tpu.dot_dimension_numbers<[1], [0], [0], [1], [0, 0, 1, 1], [], []>} : vector<8x160xbf16>, vector<160x8xbf16>, vector<8x8xf32> -> vector<8x8xf32>
    %21 = vector.broadcast %4 : vector<1x8xf32> to vector<8x8xf32>
    %22 = arith.addf %20, %21 : vector<8x8xf32>
    %c0_15 = arith.constant 0 : index
    %c0_16 = arith.constant 0 : index
    %23 = vector.load %arg6[%c0_15, %c0_16] : memref<8x8xf32, #tpu.memory_space<vmem>>, vector<8x8xf32>
    tpu.vector_store %arg6[%c0_15, %c0_16], %22 {strides = array<i32>} : memref<8x8xf32, #tpu.memory_space<vmem>>, vector<8x8xf32>,
    return
  }
  func.func @transform_0(%arg0: i32) -> (i32, i32) {
    %c0_i32 = arith.constant 0 : i32
    %c0_i32_0 = arith.constant 0 : i32
    return %arg0, %c0_i32 : i32, i32
  }
  func.func @transform_1(%arg0: i32) -> (i32, i32) {
    %c0_i32 = arith.constant 0 : i32
    %c0_i32_0 = arith.constant 0 : i32
    %c0_i32_1 = arith.constant 0 : i32
    return %c0_i32, %c0_i32_0 : i32, i32
  }
  func.func @transform_2(%arg0: i32) -> (i32, i32) {
    %c0_i32 = arith.constant 0 : i32
    %c0_i32_0 = arith.constant 0 : i32
    %c0_i32_1 = arith.constant 0 : i32
    return %c0_i32, %c0_i32_0 : i32, i32
  }
  func.func @transform_3(%arg0: i32) -> (i32, i32) {
    %c0_i32 = arith.constant 0 : i32
    %c0_i32_0 = arith.constant 0 : i32
    %c0_i32_1 = arith.constant 0 : i32
    return %c0_i32, %c0_i32_0 : i32, i32
  }
  func.func @transform_4(%arg0: i32) -> (i32, i32) {
    %c0_i32 = arith.constant 0 : i32
    %c0_i32_0 = arith.constant 0 : i32
    %c0_i32_1 = arith.constant 0 : i32
    return %c0_i32, %c0_i32_0 : i32, i32
  }
  func.func @transform_5(%arg0: i32) -> (i32, i32) {
    %c0_i32 = arith.constant 0 : i32
    %c0_i32_0 = arith.constant 0 : i32
    return %arg0, %c0_i32 : i32, i32
  }
}

</mosaic_0001>

<bundles_post_ra>
// kernel: tpu_custom_call.1
= control target key start
LH: loop header
LB: loop body
LE: loop exit
PB: predicated region body
PF: predicated region fallthrough
CT: control target
= control target key end

     0   :  { %s1314_s18 = smov 0   ;;  %s1622_s0 = inlined_call_operand.vmem [shape: f32[16,32], index: 0, kind: input, shape index: {}]   ;;  %s1623_s1 = inlined_call_operand.vmem [shape: bf16[32,512], index: 1, kind: input, shape index: {}]   ;;  %s1624_s2 = inlined_call_operand.vmem [shape: bf16[512,160], index: 2, kind: input, shape index: {}]   ;;  %s1625_s3 = inlined_call_operand.vmem [shape: bf16[160,8], index: 3, kind: input, shape index: {}]   ;;  %s1626_s4 = inlined_call_operand.vmem [shape: f32[8,512], index: 4, kind: input, shape index: {}]   ;;  %s1627_s5 = inlined_call_operand.vmem [shape: f32[16,8], index: 5, kind: output, shape index: {}]  }
   0x1 LB: > { %s1049_s19 = sadd.s32 4294967295, %s1281_s18   ;;  %p1053_p0 = scmp.ge.s32.totalorder %s1281_s18, 1  ;;  %s1281_s18 = sphi %s1314_s18, %s15_s18  }
   0x2   : > { %p186_p1 = scmp.lt.s32.totalorder %s1281_s18, 3 }
   0x4   : > { %p187_p2 = pnand %p1053_p0, %p186_p1 }
   0x5   : > { %v1157_v0 = vld [vmem:[%s1623_s1 + $0x4] ss:$16 sps:$4 sm:$0xff] (!%p187_p2)   ;;  %p212_p3 = scmp.lt.s32.totalorder (!%p187_p2), %s1049_s19, 1  ;;  %v1159_v1 = vld [vmem:[%s1623_s1] ss:$16 sps:$4 sm:$0xff] (!%p187_p2)   ;;  %v1283_v2 = vmov (!%p187_p2), 0  }
   0x6   : > { %190 = sbr.rel (%p187_p2) target bundleno = 682 (0x2aa), region = 40  ;;  %332 = vmatprep.mubr.bf16.mxu0 (!%p187_p2), %v1283_v2  ;;  %300 = vmatprep.subr.bf16.mxu0 (!%p187_p2), %v1157_v0  ;;  %v1160_v3 = vld [vmem:[%s1623_s1 + $0x24] ss:$16 sps:$4 sm:$0xff] (!%p187_p2)   ;;  %v1162_v4 = vld [vmem:[%s1623_s1 + $0x20] ss:$16 sps:$4 sm:$0xff] (!%p187_p2)   ;;  %vm296_vm0 = vcmask (!%p187_p2), 261120  }
   0x7   : > { %301 = vmatpush1.bf16.msra.mxu0 (!%p187_p2), %v1159_v1  ;;  %v1165_v5 = vld [vmem:[%s1623_s1 + $0xc] ss:$16 sps:$4 sm:$0xff] (!%p187_p2)   ;;  %v1163_v6 = vld [vmem:[%s1623_s1 + $0x8] ss:$16 sps:$4 sm:$0xff] (!%p187_p2)   ;;  %vm994_vm1 = vcmask (!%p187_p2), 64512  }
   0x8   : > { %302 = vmatprep.subr.bf16.mxu0 (!%p187_p2), %v1160_v3  ;;  %v1169_v8 = vld [vmem:[%s1624_s2 + $0x4] ss:$8 sps:$4 sm:$0xff] (!%p187_p2)   ;;  %v1171_v9 = vld [vmem:[%s1624_s2] ss:$8 sps:$4 sm:$0xff] (!%p187_p2)   ;;  %v1172_v11 = vld [vmem:[%s1624_s2 + $0x14] ss:$8 sps:$4 sm:$0xff] (!%p187_p2)  }
   0x9   : > { %v1168_v12 = vld [vmem:[%s1623_s1 + $0x2c] ss:$16 sps:$4 sm:$0xff] (!%p187_p2)   ;;  %785 = vmatprep.subr.bf16.mxu1 (!%p187_p2), %v1169_v8  ;;  %v1174_v13 = vld [vmem:[%s1624_s2 + $0x10] ss:$8 sps:$4 sm:$0xff] (!%p187_p2)   ;;  %v1180_v17 = vld [vmem:[%s1624_s2 + $0x20] ss:$8 sps:$4 sm:$0xff] (!%p187_p2)  }
   0xa   : > { %786 = vmatpush1.bf16.msra.mxu1 (!%p187_p2), %v1171_v9  ;;  %v1175_v14 = vld [vmem:[%s1624_s2 + $0x24] ss:$8 sps:$4 sm:$0xff] (!%p187_p2)   ;;  %v1166_v15 = vld [vmem:[%s1623_s1 + $0x28] ss:$16 sps:$4 sm:$0xff] (!%p187_p2)   ;;  %v1181_v18 = vld [vmem:[%s1624_s2 + $0x34] ss:$8 sps:$4 sm:$0xff] (!%p187_p2)  }
   0xb   : > { %303 = vmatpush1.bf16.msra.mxu0 (!%p187_p2), %v1162_v4  ;;  %787 = vmatprep.subr.bf16.mxu1 (!%p187_p2), %v1172_v11  ;;  %v1179_v16 = vld [vmem:[%s1624_s2 + $0x104] ss:$8 sps:$4 sm:$0xff] (!%p187_p2)   ;;  %v1177_v19 = vld [vmem:[%s1624_s2 + $0x100] ss:$8 sps:$4 sm:$0xff] (!%p187_p2)   ;;  %v1185_v20 = vld [vmem:[%s1624_s2 + $0x114] ss:$8 sps:$4 sm:$0xff] (!%p187_p2)  }
   0xc   : > { %341 = vmatprep.subr.bf16.mxu0 (!%p187_p2), %v1165_v5  ;;  %v1186_v21 = vld [vmem:[%s1624_s2 + $0x30] ss:$8 sps:$4 sm:$0xff] (!%p187_p2)   ;;  %v1187_v22 = vld [vmem:[%s1624_s2 + $0x44] ss:$8 sps:$4 sm:$0xff] (!%p187_p2)   ;;  %v1192_v25 = vld [vmem:[%s1624_s2 + $0x40] ss:$8 sps:$4 sm:$0xff] (!%p187_p2)  }
   0xd   : > { %s1629_s19 = smov (!%p212_p3, %s1049_s19), 1  ;;  %v1183_v23 = vld [vmem:[%s1624_s2 + $0x110] ss:$8 sps:$4 sm:$0xff]   ;;  %v1191_v24 = vld [vmem:[%s1624_s2 + $0x124] ss:$8 sps:$4 sm:$0xff]  }
   0xe   : > { %s1054_s28 = sshll.u32 %s1629_s19, 3  ;;  %788 = vmatpush1.bf16.msra.mxu1 %v1174_v13  ;;  %v1193_v26 = vld [vmem:[%s1624_s2 + $0x54] ss:$8 sps:$4 sm:$0xff]   ;;  %v1189_v27 = vld [vmem:[%s1624_s2 + $0x120] ss:$8 sps:$4 sm:$0xff]  }
   0xf   : > { %s215_s8 = scalar_lea.vmem %s1622_s0, %s1054_s28  ;;  %789 = vmatprep.subr.bf16.mxu1 %v1175_v14  ;;  %v1197_v28 = vld [vmem:[%s1624_s2 + $0x134] ss:$8 sps:$4 sm:$0xff]   ;;  %v1198_v29 = vld [vmem:[%s1624_s2 + $0x50] ss:$8 sps:$4 sm:$0xff]   ;;  %v1199_v30 = vld [vmem:[%s1624_s2 + $0x64] ss:$8 sps:$4 sm:$0xff]   ;;  %s219_s17 = scalar_lea.vmem %s1627_s5, %s1054_s28 }
  0x10   : > { %v221_v7 = vld [vmem:[%s215_s8] sm:$0xff]  ;;  %v1195_v31 = vld [vmem:[%s1624_s2 + $0x130] ss:$8 sps:$4 sm:$0xff]   ;;  %v1205_v34 = vld [vmem:[%s1624_s2 + $0x74] ss:$8 sps:$4 sm:$0xff]  }
  0x11   : > { %v222_v10 = vpack.c.bf16 %v221_v7, %v221_v7  ;;  %v1203_v32 = vld [vmem:[%s1624_s2 + $0x144] ss:$8 sps:$4 sm:$0xff]   ;;  %v1204_v33 = vld [vmem:[%s1624_s2 + $0x60] ss:$8 sps:$4 sm:$0xff]   ;;  %v1209_v36 = vld [vmem:[%s1624_s2 + $0x154] ss:$8 sps:$4 sm:$0xff]  }
  0x12   : > { %790 = vmatpush1.bf16.msra.mxu1 %v1180_v17  ;;  %v1201_v35 = vld [vmem:[%s1624_s2 + $0x140] ss:$8 sps:$4 sm:$0xff]   ;;  %v1210_v37 = vld [vmem:[%s1624_s2 + $0x70] ss:$8 sps:$4 sm:$0xff]   ;;  %v1211_v38 = vld [vmem:[%s1624_s2 + $0x84] ss:$8 sps:$4 sm:$0xff]  }
  0x13   : > { %1065 = vmatmul.mubr.msk.bf16.vlgmr.msra.gmra.mrb[0].mxu0 %vm296_vm0, %v222_v10  ;;  %791 = vmatprep.subr.bf16.mxu1 %v1181_v18  ;;  %v1207_v39 = vld [vmem:[%s1624_s2 + $0x150] ss:$8 sps:$4 sm:$0xff]   ;;  %v1215_v40 = vld [vmem:[%s1624_s2 + $0x164] ss:$8 sps:$4 sm:$0xff]   ;;  %v1216_v41 = vld [vmem:[%s1624_s2 + $0x80] ss:$8 sps:$4 sm:$0xff]  }
  0x14   : > { %342 = vmatpush1.bf16.msra.mxu0 %v1163_v6  ;;  %373 = vmatprep.mubr.bf16.mxu0 %v1283_v2  ;;  %v1217_v42 = vld [vmem:[%s1624_s2 + $0x94] ss:$8 sps:$4 sm:$0xff]   ;;  %v1213_v43 = vld [vmem:[%s1624_s2 + $0x160] ss:$8 sps:$4 sm:$0xff]   ;;  %v1222_v45 = vld [vmem:[%s1624_s2 + $0x90] ss:$8 sps:$4 sm:$0xff]  }
  0x15   : > { %343 = vmatprep.subr.bf16.mxu0 %v1168_v12  ;;  %v1221_v44 = vld [vmem:[%s1624_s2 + $0x174] ss:$8 sps:$4 sm:$0xff]   ;;  %v1223_v46 = vld [vmem:[%s1624_s2 + $0xa4] ss:$8 sps:$4 sm:$0xff]   ;;  %v1219_v47 = vld [vmem:[%s1624_s2 + $0x170] ss:$8 sps:$4 sm:$0xff]   ;;  %v236_v12 = vlaneseq }
  0x16   : > { %792 = vmatpush1.bf16.msra.mxu1 %v1186_v21  ;;  %v1227_v48 = vld [vmem:[%s1624_s2 + $0x184] ss:$8 sps:$4 sm:$0xff]   ;;  %v1228_v49 = vld [vmem:[%s1624_s2 + $0xa0] ss:$8 sps:$4 sm:$0xff]   ;;  %v1229_v50 = vld [vmem:[%s1624_s2 + $0xb4] ss:$8 sps:$4 sm:$0xff]  }
  0x17   : > { %793 = vmatprep.subr.bf16.mxu1 %v1187_v22  ;;  %v1225_v51 = vld [vmem:[%s1624_s2 + $0x180] ss:$8 sps:$4 sm:$0xff]   ;;  %v1233_v52 = vld [vmem:[%s1624_s2 + $0x194] ss:$8 sps:$4 sm:$0xff]   ;;  %v1234_v53 = vld [vmem:[%s1624_s2 + $0xb0] ss:$8 sps:$4 sm:$0xff]  }
  0x18   : > { %344 = vmatpush1.bf16.msra.mxu0 %v1166_v15  ;;  %v1235_v54 = vld [vmem:[%s1624_s2 + $0xc4] ss:$8 sps:$4 sm:$0xff]   ;;  %v1231_v55 = vld [vmem:[%s1624_s2 + $0x190] ss:$8 sps:$4 sm:$0xff]   ;;  %v1240_v57 = vld [vmem:[%s1624_s2 + $0xc0] ss:$8 sps:$4 sm:$0xff]  }
  0x19   : > { %826 = vmatprep.subr.bf16.mxu0 %v1179_v16  ;;  %v1239_v56 = vld [vmem:[%s1624_s2 + $0x1a4] ss:$8 sps:$4 sm:$0xff]   ;;  %v1241_v58 = vld [vmem:[%s1624_s2 + $0xd4] ss:$8 sps:$4 sm:$0xff]   ;;  %v1237_v59 = vld [vmem:[%s1624_s2 + $0x1a0] ss:$8 sps:$4 sm:$0xff]  }
  0x1a   : > { %794 = vmatpush1.bf16.msra.mxu1 %v1192_v25  ;;  %v1245_v60 = vld [vmem:[%s1624_s2 + $0x1b4] ss:$8 sps:$4 sm:$0xff]   ;;  %v1246_v61 = vld [vmem:[%s1624_s2 + $0xd0] ss:$8 sps:$4 sm:$0xff]   ;;  %v1247_v63 = vld [vmem:[%s1624_s2 + $0xe4] ss:$8 sps:$4 sm:$0xff]  }
  0x1b   : > { %1066 = vmatmul.mubr.msk.bf16.vlgmr.msra.gmra.mrb[4].mxu0 %vm296_vm0, %v222_v10  ;;  %795 = vmatprep.subr.bf16.mxu1 %v1193_v26  ;;  %v1243_v62 = vld [vmem:[%s1624_s2 + $0x1b0] ss:$8 sps:$4 sm:$0xff]   ;;  %v1251_v0 = vld [vmem:[%s1624_s2 + $0x1c4] ss:$8 sps:$4 sm:$0xff]   ;;  %v1249_v1 = vld [vmem:[%s1624_s2 + $0x1c0] ss:$8 sps:$4 sm:$0xff]  }
  0x1c   : > { %827 = vmatpush1.bf16.msra.mxu0 %v1177_v19  ;;  %v1252_v3 = vld [vmem:[%s1624_s2 + $0xe0] ss:$8 sps:$4 sm:$0xff]   ;;  %v1253_v4 = vld [vmem:[%s1624_s2 + $0xf4] ss:$8 sps:$4 sm:$0xff]   ;;  %v1255_v6 = vld [vmem:[%s1624_s2 + $0x1d0] ss:$8 sps:$4 sm:$0xff]  }
  0x1d   : > { %828 = vmatprep.subr.bf16.mxu0 %v1185_v20  ;;  %v1257_v5 = vld [vmem:[%s1624_s2 + $0x1d4] ss:$8 sps:$4 sm:$0xff]   ;;  %v1258_v7 = vld [vmem:[%s1624_s2 + $0xf0] ss:$8 sps:$4 sm:$0xff]   ;;  %v1261_v8 = vld [vmem:[%s1624_s2 + $0x1e4] ss:$8 sps:$4 sm:$0xff]  }
  0x1e   : > { %796 = vmatpush1.bf16.msra.mxu1 %v1198_v29  ;;  %v1259_v9 = vld [vmem:[%s1624_s2 + $0x1e0] ss:$8 sps:$4 sm:$0xff]   ;;  %v1264_v10 = vld [vmem:[%s1624_s2 + $0x1f4] ss:$8 sps:$4 sm:$0xff]   ;;  %v1262_v11 = vld [vmem:[%s1624_s2 + $0x1f0] ss:$8 sps:$4 sm:$0xff]  }
  0x1f   : > { %797 = vmatprep.subr.bf16.mxu1 %v1199_v30  ;;  %v1551_v13 = vshrl.u32 %v236_v12, 7  ;;  %v223_v15 = vld [vmem:[%s1626_s4] ss:$8 sm:$0xf] }
  0x20   : > { %829 = vmatpush1.bf16.msra.mxu0 %v1183_v23 }
  0x21   : > { %830 = vmatprep.subr.bf16.mxu0 %v1191_v24  ;;  %v238_v14 = vsub.s32 0, %v1551_v13  ;;  %v242_v16 = vsub.s32 1, %v1551_v13  ;;  %v246_v22 = vsub.s32 2, %v1551_v13  ;;  %v250_v25 = vsub.s32 3, %v1551_v13 }
  0x22   : > { %798 = vmatpush1.bf16.msra.mxu1 %v1204_v33 }
  0x23   : > { %799 = vmatprep.subr.bf16.mxu1 %v1205_v34  ;;  %v239_v17 = vrot.slane %v223_v15, %v238_v14  ;;  %v243_v18 = vrot.slane %v223_v15, %v242_v16  ;;  %v247_v29 = vrot.slane %v223_v15, %v246_v22 }
  0x24   : > { %831 = vmatpush1.bf16.msra.mxu0 %v1189_v27 }
  0x25   : > { %832 = vmatprep.subr.bf16.mxu0 %v1197_v28 }
  0x26   : > { %800 = vmatpush1.bf16.msra.mxu1 %v1210_v37 }
  0x27   : > { %801 = vmatprep.subr.bf16.mxu1 %v1211_v38 }
  0x28   : > { %833 = vmatpush1.bf16.msra.mxu0 %v1195_v31  ;;  %v251_v31 = vrot.slane %v223_v15, %v250_v25 }
  0x29   : > { %834 = vmatprep.subr.bf16.mxu0 %v1203_v32  ;;  %v1265_v32 = vld [vmem:[%s1625_s3] sm:$0xff]  }
  0x2a   : > { %802 = vmatpush1.bf16.msra.mxu1 %v1216_v41 }
  0x2b   : > { %803 = vmatprep.subr.bf16.mxu1 %v1217_v42 }
  0x2c   : > { %835 = vmatpush1.bf16.msra.mxu0 %v1201_v35 }
  0x2d   : > { %836 = vmatprep.subr.bf16.mxu0 %v1209_v36 }
  0x2e   : > { %804 = vmatpush1.bf16.msra.mxu1 %v1222_v45 }
  0x2f   : > { %805 = vmatprep.subr.bf16.mxu1 %v1223_v46  ;;  %v1268_v46 = vld [vmem:[%s1625_s3 + $0x18] sm:$0xff]  }
  0x30   : > { %837 = vmatpush1.bf16.msra.mxu0 %v1207_v39  ;;  %v1266_v39 = vld [vmem:[%s1625_s3 + $0x8] sm:$0xff]  }
  0x31   : > { %838 = vmatprep.subr.bf16.mxu0 %v1215_v40 }
  0x32   : > { %806 = vmatpush1.bf16.msra.mxu1 %v1228_v49  ;;  %v1271_v49 = vld [vmem:[%s1625_s3 + $0x30] sm:$0xff]  }
  0x33   : > { %807 = vmatprep.subr.bf16.mxu1 %v1229_v50  ;;  %v1272_v50 = vld [vmem:[%s1625_s3 + $0x38] sm:$0xff]  }
  0x34   : > { %839 = vmatpush1.bf16.msra.mxu0 %v1213_v43 }
  0x35   : > { %840 = vmatprep.subr.bf16.mxu0 %v1221_v44  ;;  %v1267_v44 = vld [vmem:[%s1625_s3 + $0x10] sm:$0xff]  }
  0x36   : > { %808 = vmatpush1.bf16.msra.mxu1 %v1234_v53  ;;  %v1056_v53 = vld [vmem:[%s1626_s4 + $0x1] ss:$8 sm:$0x3] }
  0x37   : > { %809 = vmatprep.subr.bf16.mxu1 %v1235_v54 }
  0x38   : > { %841 = vmatpush1.bf16.msra.mxu0 %v1219_v47  ;;  %v1269_v47 = vld [vmem:[%s1625_s3 + $0x20] sm:$0xff]  }
  0x39   : > { %842 = vmatprep.subr.bf16.mxu0 %v1227_v48  ;;  %v1270_v48 = vld [vmem:[%s1625_s3 + $0x28] sm:$0xff]  }
  0x3a   : > { %810 = vmatpush1.bf16.msra.mxu1 %v1240_v57  ;;  %v458_v57 = vrot.slane %v1056_v53, %v238_v14 }
  0x3b   : > { %811 = vmatprep.subr.bf16.mxu1 %v1241_v58 }
  0x3c   : > { %843 = vmatpush1.bf16.msra.mxu0 %v1225_v51  ;;  %v1273_v51 = vld [vmem:[%s1625_s3 + $0x40] sm:$0xff]  }
  0x3d   : > { %844 = vmatprep.subr.bf16.mxu0 %v1233_v52  ;;  %v1274_v52 = vld [vmem:[%s1625_s3 + $0x48] sm:$0xff]  }
  0x3e   : > { %812 = vmatpush1.bf16.msra.mxu1 %v1246_v61 }
  0x3f   : > { %813 = vmatprep.subr.bf16.mxu1 %v1247_v63 }
  0x40   : > { %845 = vmatpush1.bf16.msra.mxu0 %v1231_v55 }
  0x41   : > { %846 = vmatprep.subr.bf16.mxu0 %v1239_v56 }
  0x42   : > { %814 = vmatpush1.bf16.msra.mxu1 %v1252_v3 }
  0x43   : > { %815 = vmatprep.subr.bf16.mxu1 %v1253_v4 }
  0x44   : > { %847 = vmatpush1.bf16.msra.mxu0 %v1237_v59  ;;  %v462_v59 = vrot.slane %v1056_v53, %v242_v16 }
  0x45   : > { %848 = vmatprep.subr.bf16.mxu0 %v1245_v60 }
  0x46   : > { %816 = vmatpush1.bf16.msra.mxu1 %v1258_v7 }
  0x47   : > { %954 = vmatprep.subr.bf16.mxu1 %v1283_v2 }
  0x48   : > { %849 = vmatpush1.bf16.msra.mxu0 %v1243_v62 }
  0x49   : > { %850 = vmatprep.subr.bf16.mxu0 %v1251_v0 }
  0x4c   : > { %851 = vmatpush1.bf16.msra.mxu0 %v1249_v1 }
  0x4d   : > { %852 = vmatprep.subr.bf16.mxu0 %v1257_v5 }
  0x50   : > { %853 = vmatpush1.bf16.msra.mxu0 %v1255_v6 }
  0x51   : > { %854 = vmatprep.subr.bf16.mxu0 %v1261_v8  ;;  %v226_v8 = vld [vmem:[%s1626_s4 + $0x2] ss:$0 sm:$0xff] }
  0x54   : > { %855 = vmatpush1.bf16.msra.mxu0 %v1259_v9 }
  0x55   : > { %856 = vmatprep.subr.bf16.mxu0 %v1264_v10 }
  0x58   : > { %857 = vmatpush1.bf16.msra.mxu0 %v1262_v11 }
  0xe6   : > { %v334_v19 = vpop.f32.mrb[0].mxu0 }
  0xe7   : > { %v335_v20 = vadd.f32 %v334_v19, %v239_v17  ;;  %v336_v21 = vpop.f32.mrb[1].mxu0 }
  0xe8   : > { %v337_v23 = vadd.f32 %v336_v21, %v243_v18  ;;  %v338_v24 = vpop.f32.mrb[2].mxu0 }
  0xe9   : > { %v382_v26 = vmax.f32 %v335_v20, 0.0  ;;  %v339_v27 = vpop.f32.mrb[3].mxu0 }
  0xea   : > { %v383_v28 = vmax.f32 %v337_v23, 0.0 }
  0xeb   : > { %v386_v33 = vpack.c.bf16 %v382_v26, %v382_v26 }
  0xec   : > { %v387_v30 = vpack.c.bf16 %v383_v28, %v383_v28 }
  0xee   : > { %v375_v34 = vpop.f32.mrb[4].mxu0  ;;  %817 = vmatprep.mubr.bf16.mxu1 %v387_v30 }
  0xef   : > { %v376_v35 = vadd.f32 %v375_v34, %v247_v29  ;;  %v377_v36 = vpop.f32.mrb[5].mxu0  ;;  %818 = vmatmul.mubr.bf16.vlgmr.msra.gmra.mrb[0].mxu1 %v386_v33 }
  0xf0   : > { %v378_v37 = vadd.f32 %v377_v36, %v251_v31  ;;  %v379_v38 = vpop.f32.mrb[6].mxu0  ;;  %955 = vmatpush1.bf16.msra.mxu1 %v1265_v32 }
  0xf1   : > { %v384_v40 = vmax.f32 %v376_v35, 0.0  ;;  %v380_v41 = vpop.f32.mrb[7].mxu0  ;;  %956 = vmatprep.subr.bf16.mxu1 %v1283_v2 }
  0xf2   : > { %v385_v42 = vmax.f32 %v378_v37, 0.0 }
  0xf3   : > { %v388_v45 = vpack.c.bf16 %v384_v40, %v384_v40 }
  0xf4   : > { %v389_v43 = vpack.c.bf16 %v385_v42, %v385_v42  ;;  %957 = vmatpush1.bf16.msra.mxu1 %v1266_v39 }
  0xf5   : > { %958 = vmatprep.subr.bf16.mxu1 %v1283_v2 }
  0xf6   : > { %858 = vmatprep.mubr.bf16.mxu0 %v389_v43 }
  0xf7   : > { %859 = vmatmul.mubr.bf16.vlgmr.msra.gmra.mrb[8].mxu0 %v388_v45 }
  0xf8   : > { %959 = vmatpush1.bf16.msra.mxu1 %v1267_v44 }
  0xf9   : > { %960 = vmatprep.subr.bf16.mxu1 %v1283_v2 }
  0xfc   : > { %961 = vmatpush1.bf16.msra.mxu1 %v1268_v46 }
  0xfd   : > { %962 = vmatprep.subr.bf16.mxu1 %v1283_v2 }
 0x100   : > { %963 = vmatpush1.bf16.msra.mxu1 %v1269_v47 }
 0x101   : > { %964 = vmatprep.subr.bf16.mxu1 %v1283_v2 }
 0x104   : > { %965 = vmatpush1.bf16.msra.mxu1 %v1270_v48 }
 0x105   : > { %966 = vmatprep.subr.bf16.mxu1 %v1283_v2 }
 0x108   : > { %967 = vmatpush1.bf16.msra.mxu1 %v1271_v49 }
 0x109   : > { %968 = vmatprep.subr.bf16.mxu1 %v1283_v2 }
 0x10c   : > { %969 = vmatpush1.bf16.msra.mxu1 %v1272_v50 }
 0x10d   : > { %970 = vmatprep.subr.bf16.mxu1 %v1283_v2 }
 0x110   : > { %971 = vmatpush1.bf16.msra.mxu1 %v1273_v51 }
 0x111   : > { %972 = vmatprep.subr.bf16.mxu1 %v1283_v2 }
 0x114   : > { %973 = vmatpush1.bf16.msra.mxu1 %v1274_v52 }
 0x1c2   : > { %v819_v54 = vpop.f32.mrb[0].mxu1 }
 0x1c3   : > { %v821_v55 = vpop.f32.mrb[1].mxu1  ;;  %v820_v2 = vadd.f32 %v819_v54, %v458_v57 }
 0x1c4   : > { %v823_v56 = vpop.f32.mrb[2].mxu1  ;;  %v822_v60 = vadd.f32 %v821_v55, %v462_v59 }
 0x1c5   : > { %v824_v58 = vpop.f32.mrb[3].mxu1 }
 0x1ca   : > { %v860_v61 = vpop.f32.mrb[8].mxu0 }
 0x1cb   : > { %v861_v62 = vadd.f32 %v860_v61, %v820_v2  ;;  %v862_v63 = vpop.f32.mrb[9].mxu0 }
 0x1cc   : > { %v863_v0 = vadd.f32 %v862_v63, %v822_v60  ;;  %v864_v1 = vpop.f32.mrb[10].mxu0 }
 0x1cd   : > { %v867_v3 = vmax.f32 %v861_v62, 0.0  ;;  %v865_v4 = vpop.f32.mrb[11].mxu0 }
 0x1ce   : > { %v868_v5 = vmax.f32 %v863_v0, 0.0 }
 0x1cf   : > { %v869_v7 = vpack.c.bf16 %v867_v3, %v867_v3 }
 0x1d0   : > { %v870_v6 = vpack.c.bf16 %v868_v5, %v868_v5 }
 0x1d2   : > { %1141 = vmatprep.mubr.msk.bf16.mxu1 %vm296_vm0, %v870_v6 }
 0x1d3   : > { %987 = vmatmul.mubr.bf16.vlgmr.msra.gmra.mrb[4].mxu1 %v869_v7 }
 0x2a6   : > { %v988_v9 = vpop.f32.mrb[4].mxu1 }
 0x2a7   : > { %v989_v10 = vadd.f32 %v988_v9, %v226_v8  ;;  %v990_v11 = vpop.f32.mrb[5].mxu1 }
 0x2a8   : > { %v991_v12 = vpop.f32.mrb[6].mxu1 }
 0x2a9   : > { %995 = vst.msk [vmem:[%s219_s17] sm:$0xff] %vm994_vm1, %v989_v10  ;;  %v992_v13 = vpop.f32.mrb[7].mxu1 }
 0x2aa PF: > { %s15_s18 = sadd.s32 1, %s1281_s18  }
 0x2ab   : > { %p12_p4 = scmp.ge.s32.totalorder %s15_s18, 4  }
 0x2ad   :  { %14 = sbr.rel (!%p12_p4) target bundleno = 1 (0x1), region = 71 }

</bundles_post_ra>
